<compile_context>
chip_gen: v5e
topology: v5e:2x2
jax: 0.10.0
libtpu: 0.0.40
codegen_flags: <defaults>
</compile_context>

<pallas_src>
import math

import numpy as np
import jax
import jax.numpy as jnp
from jax.experimental import pallas as pl
from jax.experimental.pallas import tpu as pltpu


def _interp_matrix_np(out_size: int, in_size: int, scale=None) -> np.ndarray:
    """Dense (out_size, in_size) bilinear interpolation matrix (host constant).

    Matches PyTorch F.interpolate(mode='bilinear', align_corners=False):
        src = (dst + 0.5) * step - 0.5, clamped to [0, in-1],
    where step = 1/scale_factor when a scale_factor is given (modern PyTorch)
    and in/out otherwise, followed by a linear blend of floor(src), floor+1.
    """
    dst = np.arange(out_size, dtype=np.float64)
    step = (1.0 / float(scale)) if (scale is not None and scale > 0) else (in_size / out_size)
    src = (dst + 0.5) * step - 0.5
    src = np.clip(src, 0.0, float(in_size - 1))
    lo = np.floor(src).astype(np.int64)
    hi = np.minimum(lo + 1, in_size - 1)
    frac = src - lo
    m = np.zeros((out_size, in_size), dtype=np.float64)
    m[np.arange(out_size), lo] += 1.0 - frac
    m[np.arange(out_size), hi] += frac
    return m


def _bilinear_kernel(x_ref, wht_ref, wwt_ref, o_ref):
    # x_ref   : (TC, Hin, Win)   channel slab
    # wht_ref : (Hin, Hout)      height interp matrix, transposed (bf16)
    # wwt_ref : (Win, Wout)      width  interp matrix, transposed (bf16)
    # o_ref   : (TC, Hout, Wout)
    tc, h_in, w_in = x_ref.shape
    h_out = wht_ref.shape[1]
    w_out = wwt_ref.shape[1]

    # Explicit bf16 operands: TPU default precision demotes f32 on the MXU
    # anyway, so this is the same accuracy with half the VMEM traffic.
    x = x_ref[...].astype(jnp.bfloat16)

    # ---- height pass: one fat 2-D MXU matmul, M = TC*Win --------------------
    # (c,h,w) -> (c,w,h): batched minor-dim swap (XLU); merging (c,w) into the
    # sublane dim is a free row-major reshape (last dim unchanged).
    xt = jnp.swapaxes(x, 1, 2).reshape(tc * w_in, h_in)
    y = jnp.dot(xt, wht_ref[...], preferred_element_type=jnp.float32)  # (TC*Win, Hout)

    # ---- width pass: one fat 2-D MXU matmul, M = TC*Hout --------------------
    y = jnp.swapaxes(y.reshape(tc, w_in, h_out).astype(jnp.bfloat16), 1, 2)
    out = jnp.dot(y.reshape(tc * h_out, w_in), wwt_ref[...],
                  preferred_element_type=jnp.float32)                  # (TC*Hout, Wout)

    # TODO(synk): for Wout < 128 the store below is a masked vst; a lane-dense
    # (TC, Hout*Wout) out block would need an in-kernel sublane->lane relayout
    # that costs roughly what the masked stores cost, so it is not done here.
    o_ref[...] = out.reshape(tc, h_out, w_out).astype(o_ref.dtype)


def _bilinear_kernel_fallback(x_ref, wht_ref, wwt_ref, o_ref):
    # Conservative height pass (broadcast Wh + batched matmul).  Only used if
    # the fat-matmul kernel above fails to lower on this jax/libtpu version.
    tc, h_in, w_in = x_ref.shape
    h_out = wht_ref.shape[1]
    w_out = wwt_ref.shape[1]

    x = x_ref[...].astype(jnp.bfloat16)
    tmp = jnp.dot(x.reshape(tc * h_in, w_in), wwt_ref[...],
                  preferred_element_type=jnp.float32)
    tmp = tmp.reshape(tc, h_in, w_out).astype(jnp.bfloat16)
    wh_b = jnp.broadcast_to(wht_ref[...].T, (tc, h_out, h_in))
    out = jax.lax.dot_general(wh_b, tmp,
                              dimension_numbers=(((2,), (1,)), ((0,), (0,))),
                              preferred_element_type=jnp.float32)
    o_ref[...] = out.astype(o_ref.dtype)


def _vmem_limit_bytes() -> int:
    """Generation-aware scoped-VMEM ask: ~40 MiB on 128-MiB parts (v5e/v6e),
    ~32 MiB on v7x (64 MiB physical per TensorCore)."""
    try:
        cap = int(pltpu.get_tpu_info().vmem_capacity_bytes)
    except Exception:
        cap = 64 * 1024 * 1024  # conservative: v7x per-core VMEM
    return max(16 * 1024 * 1024, min(cap // 2, 40 * 1024 * 1024))


def _choose_channel_tile(nc, h_in, w_in, h_out, w_out, itemsize, vmem_budget_bytes):
    """Channels per grid step.

    Sized so (double-buffered in/out blocks + in-kernel temporaries) fit the
    VMEM budget, capped so there are >= 2 grid steps (pipeline overlap and
    work for both v7x TensorCores), and preferring a tile that divides N*C
    exactly so the wrapper needs no pad + slice HBM passes.
    """
    per_ch = (2 * h_in * w_in * itemsize        # input block (double buffered)
              + 2 * h_out * w_out * itemsize    # output block (double buffered)
              + 2 * 2 * h_in * w_in             # bf16 x + transposed copy
              + (4 + 2 + 2) * w_in * h_out      # f32 height result + bf16 + transposed
              + 4 * h_out * w_out               # f32 width result
              + 2 * h_out * h_in)               # fallback path: broadcast Wh slab
    tc_vmem = max(1, int(vmem_budget_bytes) // per_ch)
    tc_two_steps = max(1, -(-nc // 2))          # ceil(nc/2): keep >= 2 grid steps
    tc_max = max(1, min(nc, tc_vmem, tc_two_steps))

    # Largest divisor of nc that fits -> no channel padding at all.
    best_div = 1
    for d in range(1, tc_max + 1):
        if nc % d == 0:
            best_div = d
    if 4 * best_div >= 3 * tc_max:              # within ~25% of the budget-optimal tile
        return best_div

    # Ragged nc: pad a few channels rather than shrinking the tile a lot.
    # TODO(synk): handle the ragged tail in-kernel (clamped index_map + pl.when)
    # to avoid the pad/slice HBM passes entirely.
    tc = tc_max
    if tc >= 16:
        tc -= tc % 16                           # bf16 sublane packing for matmul M dims
    elif tc >= 8:
        tc -= tc % 8
    return tc


def _pallas_resize(kernel_fn, x_flat, wht, wwt, tc, out_dtype, h_out, w_out, vmem_limit):
    nc_pad, h_in, w_in = x_flat.shape
    num_blocks = nc_pad // tc
    return pl.pallas_call(
        kernel_fn,
        out_shape=jax.ShapeDtypeStruct((nc_pad, h_out, w_out), out_dtype),
        grid_spec=pltpu.PrefetchScalarGridSpec(
            num_scalar_prefetch=0,
            grid=(num_blocks,),
            in_specs=[
                pl.BlockSpec((tc, h_in, w_in), lambda i: (i, 0, 0)),
                # Interp matrices are grid-invariant (constant index_map), so
                # they are DMA'd once for the whole grid.
                pl.BlockSpec((h_in, h_out), lambda i: (0, 0)),
                pl.BlockSpec((w_in, w_out), lambda i: (0, 0)),
            ],
            out_specs=pl.BlockSpec((tc, h_out, w_out), lambda i: (i, 0, 0)),
        ),
        compiler_params=pltpu.CompilerParams(
            # TODO(synk): on v7x, pltpu.CORE_PARALLEL on this axis would force
            # the channel-slab loop across both TensorCores if plain
            # "parallel" does not already shard it.
            dimension_semantics=("parallel",),
            vmem_limit_bytes=int(vmem_limit),
        ),
    )(x_flat, wht, wwt)


_FAST_PATH_OK = None  # None: not yet probed; True/False after first compile.


def interpolate_bilinear(x: jnp.ndarray, scale_factor=None, size=None) -> jnp.ndarray:
    """Bilinear resize (align_corners=False) of an NCHW tensor via Pallas."""
    global _FAST_PATH_OK
    n, c, h_in, w_in = x.shape

    if scale_factor is not None:
        if isinstance(scale_factor, (tuple, list)):
            sc_h, sc_w = scale_factor
        else:
            sc_h = sc_w = scale_factor
        h_out = int(math.floor(h_in * sc_h))     # PyTorch output size: floor(in*scale)
        w_out = int(math.floor(w_in * sc_w))
        scale_h, scale_w = float(sc_h), float(sc_w)
    else:
        if isinstance(size, (tuple, list)):
            h_out, w_out = int(size[0]), int(size[1])
        else:
            h_out = w_out = int(size)
        scale_h = scale_w = None

    out_dtype = x.dtype
    # TODO(synk): a precision=HIGHEST path could be added for bit-level f32
    # fidelity; bf16 operands match TPU default-precision behavior.
    wht = jnp.asarray(_interp_matrix_np(h_out, h_in, scale_h).T, dtype=jnp.bfloat16)  # (Hin, Hout)
    wwt = jnp.asarray(_interp_matrix_np(w_out, w_in, scale_w).T, dtype=jnp.bfloat16)  # (Win, Wout)

    nc = n * c
    vmem_limit = _vmem_limit_bytes()
    weights_bytes = 2 * 2 * (h_in * h_out + w_in * w_out)               # bf16, 2x buffered
    budget = max(2 * 1024 * 1024, vmem_limit - weights_bytes - 4 * 1024 * 1024)
    itemsize = np.dtype(out_dtype).itemsize
    tc = _choose_channel_tile(nc, h_in, w_in, h_out, w_out, itemsize, budget)

    # TODO(synk): for very large spatial sizes a banded, Hout/Wout-tiled
    # variant (extra grid axes + pl.ds over input row bands) is needed to keep
    # blocks inside VMEM and to exploit the 2-nonzeros-per-row sparsity.
    x_flat = x.reshape(nc, h_in, w_in)           # free row-major reshape
    if nc % tc:
        pad = tc * ((nc + tc - 1) // tc) - nc
        x_flat = jnp.pad(x_flat, ((0, pad), (0, 0), (0, 0)))

    args = (x_flat, wht, wwt, tc, out_dtype, h_out, w_out, vmem_limit)
    if _FAST_PATH_OK is None:
        try:
            out_flat = _pallas_resize(_bilinear_kernel, *args)
            _FAST_PATH_OK = True
        except Exception:
            _FAST_PATH_OK = False
            out_flat = _pallas_resize(_bilinear_kernel_fallback, *args)
    elif _FAST_PATH_OK:
        out_flat = _pallas_resize(_bilinear_kernel, *args)
    else:
        out_flat = _pallas_resize(_bilinear_kernel_fallback, *args)

    if out_flat.shape[0] != nc:
        out_flat = out_flat[:nc]
    return out_flat.reshape(n, c, h_out, w_out)


class Interpolate:
    """JAX/Pallas port of the PyTorch Interpolate module."""

    def __init__(self, scale_factor, size=None, mode="bilinear"):
        assert mode == "bilinear", "only bilinear mode is implemented"
        self.scale = scale_factor
        self.size = size
        self.mode = mode

    def __call__(self, x):
        # The reference forward always uses scale_factor; size= is honored
        # only if scale_factor is None.
        if self.scale is not None:
            return interpolate_bilinear(x, scale_factor=self.scale)
        return interpolate_bilinear(x, size=self.size)


if __name__ == "__main__":
    key = jax.random.PRNGKey(0)
    x = jax.random.normal(key, (2, 4, 16, 16), dtype=jnp.float32)  # NCHW

    model = Interpolate(scale_factor=2, mode="bilinear")
    y = jax.block_until_ready(model(x))
    assert y.shape == (2, 4, 32, 32)

    # Sanity: compare against the same separable bilinear weights applied with
    # plain jnp ops.  The reference mirrors the kernel's explicit bf16 operand
    # cast, so a bf16-level tolerance is enough to catch any real plumbing bug.
    wh = jnp.asarray(_interp_matrix_np(32, 16, 2.0), dtype=jnp.float32)
    ww = jnp.asarray(_interp_matrix_np(32, 16, 2.0), dtype=jnp.float32)
    xb = x.astype(jnp.bfloat16).astype(jnp.float32)
    ref = jnp.einsum("oh,nchw,pw->ncop", wh, xb, ww)
    err = float(jnp.max(jnp.abs(y.astype(jnp.float32) - ref)))
    assert err < 5e-2, f"max abs err {err}"

    print("KERNEL_OK")
</pallas_src>

<mosaic_0001>
module attributes {stable_mosaic.version = 11 : i64} {
  func.func @_bilinear_kernel(%arg0: i32, %arg1: memref<4x16x16xf32, #tpu.memory_space<vmem>>, %arg2: memref<16x32xbf16, #tpu.memory_space<vmem>>, %arg3: memref<16x32xbf16, #tpu.memory_space<vmem>>, %arg4: memref<4x32x32xf32, #tpu.memory_space<vmem>>) attributes {dimension_semantics = [#tpu.dimension_semantics<parallel>], iteration_bounds = array<i64: 2>, scalar_prefetch = 0 : i64, scratch_operands = 0 : i64, tpu.core_type = #tpu.core_type<tc>, window_params = [{transform_indices = @transform_0, window_bounds = array<i64: 4, 16, 16>}, {pipeline_mode = #tpu.pipeline_mode<synchronous>, transform_indices = @transform_1, window_bounds = array<i64: 16, 32>}, {pipeline_mode = #tpu.pipeline_mode<synchronous>, transform_indices = @transform_2, window_bounds = array<i64: 16, 32>}, {transform_indices = @transform_3, window_bounds = array<i64: 4, 32, 32>}]} {
    %c0 = arith.constant 0 : index
    %c0_0 = arith.constant 0 : index
    %c0_1 = arith.constant 0 : index
    %0 = vector.load %arg1[%c0, %c0_0, %c0_1] : memref<4x16x16xf32, #tpu.memory_space<vmem>>, vector<4x16x16xf32>
    %1 = arith.truncf %0 : vector<4x16x16xf32> to vector<4x16x16xbf16>
    %2 = tpu.transpose %1, [0, 2, 1] : vector<4x16x16xbf16> -> vector<4x16x16xbf16>
    %3 = vector.shape_cast %2 : vector<4x16x16xbf16> to vector<64x16xbf16>
    %c0_2 = arith.constant 0 : index
    %c0_3 = arith.constant 0 : index
    %4 = vector.load %arg2[%c0_2, %c0_3] : memref<16x32xbf16, #tpu.memory_space<vmem>>, vector<16x32xbf16>
    %cst = arith.constant dense<0.000000e+00> : vector<64x32xf32>
    %5 = tpu.matmul %3, %4, %cst {dimension_numbers = #tpu.dot_dimension_numbers<[1], [0], [0], [1], [0, 0, 1, 1], [], []>} : vector<64x16xbf16>, vector<16x32xbf16>, vector<64x32xf32> -> vector<64x32xf32>
    %6 = vector.shape_cast %5 : vector<64x32xf32> to vector<4x16x32xf32>
    %7 = arith.truncf %6 : vector<4x16x32xf32> to vector<4x16x32xbf16>
    %8 = tpu.transpose %7, [0, 2, 1] : vector<4x16x32xbf16> -> vector<4x32x16xbf16>
    %9 = vector.shape_cast %8 : vector<4x32x16xbf16> to vector<128x16xbf16>
    %c0_4 = arith.constant 0 : index
    %c0_5 = arith.constant 0 : index
    %10 = vector.load %arg3[%c0_4, %c0_5] : memref<16x32xbf16, #tpu.memory_space<vmem>>, vector<16x32xbf16>
    %cst_6 = arith.constant dense<0.000000e+00> : vector<128x32xf32>
    %11 = tpu.matmul %9, %10, %cst_6 {dimension_numbers = #tpu.dot_dimension_numbers<[1], [0], [0], [1], [0, 0, 1, 1], [], []>} : vector<128x16xbf16>, vector<16x32xbf16>, vector<128x32xf32> -> vector<128x32xf32>
    %12 = vector.shape_cast %11 : vector<128x32xf32> to vector<4x32x32xf32>
    %c0_7 = arith.constant 0 : index
    %c0_8 = arith.constant 0 : index
    %c0_9 = arith.constant 0 : index
    %13 = vector.load %arg4[%c0_7, %c0_8, %c0_9] : memref<4x32x32xf32, #tpu.memory_space<vmem>>, vector<4x32x32xf32>
    tpu.vector_store %arg4[%c0_7, %c0_8, %c0_9], %12 {strides = array<i32>} : memref<4x32x32xf32, #tpu.memory_space<vmem>>, vector<4x32x32xf32>,
    return
  }
  func.func @transform_0(%arg0: i32) -> (i32, i32, i32) {
    %c0_i32 = arith.constant 0 : i32
    %c0_i32_0 = arith.constant 0 : i32
    %c0_i32_1 = arith.constant 0 : i32
    return %arg0, %c0_i32, %c0_i32_0 : i32, i32, i32
  }
  func.func @transform_1(%arg0: i32) -> (i32, i32) {
    %c0_i32 = arith.constant 0 : i32
    %c0_i32_0 = arith.constant 0 : i32
    %c0_i32_1 = arith.constant 0 : i32
    return %c0_i32, %c0_i32_0 : i32, i32
  }
  func.func @transform_2(%arg0: i32) -> (i32, i32) {
    %c0_i32 = arith.constant 0 : i32
    %c0_i32_0 = arith.constant 0 : i32
    %c0_i32_1 = arith.constant 0 : i32
    return %c0_i32, %c0_i32_0 : i32, i32
  }
  func.func @transform_3(%arg0: i32) -> (i32, i32, i32) {
    %c0_i32 = arith.constant 0 : i32
    %c0_i32_0 = arith.constant 0 : i32
    %c0_i32_1 = arith.constant 0 : i32
    return %arg0, %c0_i32, %c0_i32_0 : i32, i32, i32
  }
}

module attributes {stable_mosaic.version = 11 : i64} {
  func.func @_bilinear_kernel_fallback(%arg0: i32, %arg1: memref<4x16x16xf32, #tpu.memory_space<vmem>>, %arg2: memref<16x32xbf16, #tpu.memory_space<vmem>>, %arg3: memref<16x32xbf16, #tpu.memory_space<vmem>>, %arg4: memref<4x32x32xf32, #tpu.memory_space<vmem>>) attributes {dimension_semantics = [#tpu.dimension_semantics<parallel>], iteration_bounds = array<i64: 2>, scalar_prefetch = 0 : i64, scratch_operands = 0 : i64, tpu.core_type = #tpu.core_type<tc>, window_params = [{transform_indices = @transform_0, window_bounds = array<i64: 4, 16, 16>}, {pipeline_mode = #tpu.pipeline_mode<synchronous>, transform_indices = @transform_1, window_bounds = array<i64: 16, 32>}, {pipeline_mode = #tpu.pipeline_mode<synchronous>, transform_indices = @transform_2, window_bounds = array<i64: 16, 32>}, {transform_indices = @transform_3, window_bounds = array<i64: 4, 32, 32>}]} {
    %c0 = arith.constant 0 : index
    %c0_0 = arith.constant 0 : index
    %c0_1 = arith.constant 0 : index
    %0 = vector.load %arg1[%c0, %c0_0, %c0_1] : memref<4x16x16xf32, #tpu.memory_space<vmem>>, vector<4x16x16xf32>
    %1 = arith.truncf %0 : vector<4x16x16xf32> to vector<4x16x16xbf16>
    %2 = vector.shape_cast %1 : vector<4x16x16xbf16> to vector<64x16xbf16>
    %c0_2 = arith.constant 0 : index
    %c0_3 = arith.constant 0 : index
    %3 = vector.load %arg3[%c0_2, %c0_3] : memref<16x32xbf16, #tpu.memory_space<vmem>>, vector<16x32xbf16>
    %cst = arith.constant dense<0.000000e+00> : vector<64x32xf32>
    %4 = tpu.matmul %2, %3, %cst {dimension_numbers = #tpu.dot_dimension_numbers<[1], [0], [0], [1], [0, 0, 1, 1], [], []>} : vector<64x16xbf16>, vector<16x32xbf16>, vector<64x32xf32> -> vector<64x32xf32>
    %5 = vector.shape_cast %4 : vector<64x32xf32> to vector<4x16x32xf32>
    %6 = arith.truncf %5 : vector<4x16x32xf32> to vector<4x16x32xbf16>
    %c0_4 = arith.constant 0 : index
    %c0_5 = arith.constant 0 : index
    %7 = vector.load %arg2[%c0_4, %c0_5] : memref<16x32xbf16, #tpu.memory_space<vmem>>, vector<16x32xbf16>
    %8 = tpu.transpose %7, [1, 0] : vector<16x32xbf16> -> vector<32x16xbf16>
    %9 = vector.shape_cast %8 : vector<32x16xbf16> to vector<1x32x16xbf16>
    %10 = vector.broadcast %9 : vector<1x32x16xbf16> to vector<4x32x16xbf16>
    %cst_6 = arith.constant dense<0.000000e+00> : vector<4x32x32xf32>
    %11 = tpu.matmul %10, %6, %cst_6 {dimension_numbers = #tpu.dot_dimension_numbers<[2], [1], [1], [2], [0, 0, 0, 1, 1, 2], [0], [0]>} : vector<4x32x16xbf16>, vector<4x16x32xbf16>, vector<4x32x32xf32> -> vector<4x32x32xf32>
    %c0_7 = arith.constant 0 : index
    %c0_8 = arith.constant 0 : index
    %c0_9 = arith.constant 0 : index
    %12 = vector.load %arg4[%c0_7, %c0_8, %c0_9] : memref<4x32x32xf32, #tpu.memory_space<vmem>>, vector<4x32x32xf32>
    tpu.vector_store %arg4[%c0_7, %c0_8, %c0_9], %11 {strides = array<i32>} : memref<4x32x32xf32, #tpu.memory_space<vmem>>, vector<4x32x32xf32>,
    return
  }
  func.func @transform_0(%arg0: i32) -> (i32, i32, i32) {
    %c0_i32 = arith.constant 0 : i32
    %c0_i32_0 = arith.constant 0 : i32
    %c0_i32_1 = arith.constant 0 : i32
    return %arg0, %c0_i32, %c0_i32_0 : i32, i32, i32
  }
  func.func @transform_1(%arg0: i32) -> (i32, i32) {
    %c0_i32 = arith.constant 0 : i32
    %c0_i32_0 = arith.constant 0 : i32
    %c0_i32_1 = arith.constant 0 : i32
    return %c0_i32, %c0_i32_0 : i32, i32
  }
  func.func @transform_2(%arg0: i32) -> (i32, i32) {
    %c0_i32 = arith.constant 0 : i32
    %c0_i32_0 = arith.constant 0 : i32
    %c0_i32_1 = arith.constant 0 : i32
    return %c0_i32, %c0_i32_0 : i32, i32
  }
  func.func @transform_3(%arg0: i32) -> (i32, i32, i32) {
    %c0_i32 = arith.constant 0 : i32
    %c0_i32_0 = arith.constant 0 : i32
    %c0_i32_1 = arith.constant 0 : i32
    return %arg0, %c0_i32, %c0_i32_0 : i32, i32, i32
  }
}

</mosaic_0001>

<bundles_post_ra>
// kernel: tpu_custom_call.1
= control target key start
LH: loop header
LB: loop body
LE: loop exit
PB: predicated region body
PF: predicated region fallthrough
CT: control target
= control target key end

     0   :  { %8 = vsyncpa [#allocation3], 0  ;;  %s1141_s0 = inlined_call_operand.hbm [shape: f32[8,16,16], index: 0, kind: input, shape index: {}]   ;;  %s1142_s1 = inlined_call_operand.hbm [shape: bf16[16,32], index: 1, kind: input, shape index: {}]   ;;  %s1143_s2 = inlined_call_operand.hbm [shape: bf16[16,32], index: 2, kind: input, shape index: {}]   ;;  %s1144_s3 = inlined_call_operand.hbm [shape: f32[8,32,32], index: 3, kind: output, shape index: {}]  }
   0x1   :  { %10 = vsyncpa [#allocation3 + $0x1], 0 }
   0x2   :  { %11 = vsyncpa [#allocation6], 0 }
   0x3   :  { %12 = vsyncpa [#allocation4], 0 }
   0x4   :  { %14 = vsyncpa [#allocation4 + $0x1], 0  ;;  %s952_s12 = smov 0   ;;  %s954_s13 = smov 0  }
   0x5   :  { %s956_s14 = smov 0   ;;  %s958_s15 = smov 0  }
   0x6 LB: > { %s973_s16 = sadd.s32 4294967295, %s922_s15   ;;  %s629_s17 = sadd.s32 4294967294, %s922_s15   ;;  %s922_s15 = sphi %s958_s15, %s1154_s15   ;;  %s918_s14 = sphi %s956_s14, %s1153_s14   ;;  %s914_s13 = sphi %s954_s13, %s1152_s13   ;;  %s910_s12 = sphi %s952_s12, %s1151_s12  }
   0x7   : > { %p40_p0 = scmp.ne.s32.totalorder %s914_s13, %s910_s12  ;;  %p41_p1 = scmp.eq.s32.totalorder %s973_s16, 0 }
   0x8   : > { %p106_p2 = scmp.eq.s32.totalorder %s973_s16, 1  ;;  %p112_p3 = scmp.eq.s32.totalorder %s629_s17, 1 }
   0x9   : > { %p982_p4 = por %p41_p1, %p40_p0  ;;  %p630_p5 = scmp.ge.s32.totalorder %s922_s15, 1 }
   0xa   : > { %p987_p6 = por %p112_p3, %p40_p0  ;;  %p119_p7 = scmp.lt.s32.totalorder %s922_s15, 3 }
   0xb   : > { %s130_s22 = sshll.u32 %s1142_s1, 4  ;;  %s924_s24 = smov [#allocation5]   ;;  %s131_s22 = int_to_ptr.hbm [resolvable:$true] %s130_s22 }
   0xc   : > { %p995_p8 = pnand %p630_p5, %p119_p7  ;;  %s132_s25 = sshll.u32 %s924_s24, 4  ;;  %s133_s25 = int_to_ptr.vmem [resolvable:$true] %s132_s25 }
   0xd   : > { %s144_s28 = sshll.u32 %s1143_s2, 4  ;;  %s925_s29 = smov 64   ;;  %s145_s28 = int_to_ptr.hbm [resolvable:$true] %s144_s28 }
   0xe   : > { %p690_p9 = pneg %p995_p8  ;;  %s926_s30 = smov 4  }
   0xf   : > { %s927_s4 = smov [#allocation7]   ;;  %s1008_s6 = sadd.s32 1, %s922_s15  }
  0x10   : > { %p691_p10 = pnand %p690_p9, %p41_p1  ;;  %s146_s5 = sshll.u32 %s927_s4, 4  ;;  %s147_s5 = int_to_ptr.vmem [resolvable:$true] %s146_s5 }
  0x11   : > { %s27_s7 = sadd.s32 1, %s918_s14  ;;  %s24_s8 = ssub.s32 %s922_s15, %s1008_s6 }
  0x12   : > { %693 = dma.hbm_to_vmem [thread:$0]  (!%p691_p10), %s131_s22, 128, %s133_s25, [#allocation6], %s925_s29, %s925_s29, %s926_s30  }
  0x13   : > { %696 = dma.hbm_to_vmem [thread:$0]  (!%p691_p10), %s145_s28, 128, %s147_s5, [#allocation6], %s925_s29, %s925_s29, %s926_s30  }
  0x14   : > { %p34_p12 = scmp.ne.s32.totalorder %s918_s14, %s914_s13  ;;  %p25_p13 = scmp.eq.s32.totalorder %s24_s8, 0 }
  0x15   : > { %p35_p0 = scmp.eq.s32.totalorder %s922_s15, 0  ;;  %p707_p5 = scmp.lt.s32.totalorder %s922_s15, 2 }
  0x16   : > { %p1018_p3 = por %p106_p2, %p34_p12  ;;  %s160_s11 = sand.u32 1, %s918_s14  }
  0x17   : > { %s1024_s10 = scalar_select %p25_p13, %s918_s14, %s27_s7  }
  0x18   : > { %p36_p7 = por %p35_p0, %p34_p12  ;;  %s634_s17 = sshll.u32 %s160_s11, 6 }
  0x19   : > { %s670_s20 = sshll.u32 %s922_s15, 6  ;;  %s164_s25 = scalar_lea.vmem [#allocation2], %s634_s17 }
  0x1a   : > { %s170_s24 = scalar_lea.hbm %s1141_s0, %s670_s20  ;;  %s173_s26 = sshll.u32 %s164_s25, 4  ;;  %s174_s26 = int_to_ptr.vmem [resolvable:$true] %s173_s26 }
  0x1b   : > { %s171_s27 = sshll.u32 %s170_s24, 4  ;;  %p1031_p2 = pnand %p707_p5, %p36_p7  ;;  %s172_s27 = int_to_ptr.hbm [resolvable:$true] %s171_s27 }
  0x1c   : > { %s161_s29 = scalar_lea.sflag [#allocation3], %s160_s11  ;;  %s822_s30 = sshra.s32 %s172_s27, 4  ;;  %s823_s30 = int_to_ptr.hbm [resolvable:$true] %s822_s30 }
  0x1d   : > { %s824_s4 = scalar_lea.hbm %s823_s30, 64  ;;  %p826_p10 = pneg %p1031_p2 }
  0x1e   : > { %p825_p9 = scmp.ne.s32.totalorder %s823_s30, %s824_s4  ;;  %s829_s8 = scalar_lea.hbm %s1141_s0, 128 }
  0x1f   : > { %p830_p0 = scmp.lt.s32.totalorder %s823_s30, %s1141_s0  ;;  %p831_p5 = scmp.lt.s32.totalorder %s829_s8, %s824_s4 }
  0x20   : > { %p827_p12 = pnand %p826_p10, %p825_p9 }
  0x21   : > { %p832_p7 = por %p831_p5, %p830_p0 }
  0x22   : > { %p828_p13 = pneg %p827_p12 }
  0x24   : > { %p833_p11 = pnand %p832_p7, %p828_p13 }
  0x26   : > { %836 = shalt.err (!%p833_p11)
}
  0x27   : > { %s928_s11 = smov 128   ;;  %s929_s21 = smov 8  }
  0x28   : > { %700 = dma.hbm_to_vmem [thread:$0]  (!%p1031_p2), %s172_s27, 1024, %s174_s26, %s161_s29, %s928_s11, %s928_s11, %s929_s21  }
  0x29   : > { %185 = sbr.rel (%p995_p8) target bundleno = 739 (0x2e3), region = 32  ;;  %s1048_s22 = sand.u32 (!%p995_p8), 1, %s914_s13  }
  0x2a   : > { %s639_s24 = sshll.u32 (!%p995_p8), %s1048_s22, 6  ;;  %s188_s25 = scalar_lea.sflag (!%p995_p8), [#allocation3], %s1048_s22 }
  0x2b   : > { %s191_s30 = scalar_lea.vmem (!%p995_p8), [#allocation2], %s639_s24 }
  0x2e   : > { %897 = dma.done.wait (%p982_p4), %s188_s25, 1024  }
  0x2f   : > { %899 = vsyncadd (%p982_p4), %s188_s25, 4294966272 }
  0x30   : > { %901 = dma.done.wait (%p41_p1), [#allocation6], 256  }
  0x31   : > { %903 = vsyncadd (%p41_p1), [#allocation6], 4294967040  ;;  %v228_v0 = vld [vmem:[%s191_s30] sm:$0xff]  ;;  %v229_v1 = vld [vmem:[%s191_s30 + $0x8] sm:$0xff]  ;;  %vm312_vm0 = vcmask 130048   ;;  %s642_s18 = sshll.u32 %s1048_s22, 7 }
  0x32   : > { %v236_v2 = vpack.c.bf16 %v229_v1, %v228_v0  ;;  %v234_v3 = vld [vmem:[%s191_s30 + $0x30] sm:$0xff]  ;;  %v235_v4 = vld [vmem:[%s191_s30 + $0x38] sm:$0xff]  ;;  %v671_v6 = vld [vmem:[#allocation5] sm:$0xff]  ;;  %vm503_vm1 = vcmask 261120   ;;  %s1073_s23 = scalar_lea.vmem [#allocation8], %s642_s18  ;;  %s674_s26 = sshll.u32 %s973_s16, 7 }
  0x33   : > { %v239_v5 = vpack.c.bf16 %v235_v4, %v234_v3  ;;  %332 = vmatpush.bf16.msra.mxu0 %v671_v6  ;;  %675 = vmatpush.bf16.msra.mxu3 %v671_v6  ;;  %v230_v7 = vld [vmem:[%s191_s30 + $0x10] sm:$0xff]  ;;  %v231_v8 = vld [vmem:[%s191_s30 + $0x18] sm:$0xff]  ;;  %v232_v9 = vld [vmem:[%s191_s30 + $0x20] sm:$0xff]  ;;  %s533_s29 = scalar_lea.hbm %s1144_s3, %s674_s26  ;;  %s534_s4 = sshll.u32 %s1073_s23, 4  ;;  %s535_s4 = int_to_ptr.vmem [resolvable:$true] %s534_s4 }
  0x34   : > { %240 = vxpose.xlu0.c.b16.start.end [1/1] (short) (narrow) %v236_v2, 16  ;;  %v233_v10 = vld [vmem:[%s191_s30 + $0x28] sm:$0xff]  ;;  %v237_v11 = vpack.c.bf16 %v231_v8, %v230_v7  ;;  %s536_s5 = sshll.u32 %s533_s29, 4  ;;  %s521_s7 = scalar_lea.sflag [#allocation4], %s1048_s22  ;;  %s537_s5 = int_to_ptr.hbm [resolvable:$true] %s536_s5 }
  0x35   : > { %288 = vxpose.xlu1.c.b16.start.end [1/1] (short) (narrow) %v239_v5, 16  ;;  %v238_v12 = vpack.c.bf16 %v233_v10, %v232_v9  ;;  %v672_v29 = vld [vmem:[#allocation7] sm:$0xff]  ;;  %s866_s16 = sshra.s32 %s537_s5, 4  ;;  %s872_s11 = scalar_lea.hbm %s1144_s3, 256  ;;  %s867_s16 = int_to_ptr.hbm [resolvable:$true] %s866_s16 }
  0x36   : > { %461 = vmatpush.bf16.msra.mxu1 %v672_v29  ;;  %676 = vmatpush.bf16.msra.mxu2 %v672_v29  ;;  %s868_s8 = scalar_lea.hbm %s867_s16, 128  ;;  %p873_p11 = scmp.lt.s32.totalorder %s867_s16, %s1144_s3 }
  0x37   : > { %677 = vmatpush.bf16.msrb.mxu3 %v672_v29  ;;  %p869_p1 = scmp.ne.s32.totalorder %s867_s16, %s868_s8  ;;  %p874_p2 = scmp.lt.s32.totalorder %s872_s11, %s868_s8 }
  0x39   : > { %p870_p4 = pnand %p869_p1, %p1018_p3  ;;  %p875_p9 = por %p874_p2, %p873_p11 }
  0x3b   : > { %p871_p8 = pneg %p870_p4 }
  0x3d   : > { %p876_p10 = pnand %p875_p9, %p871_p8 }
  0x44   : > { %256 = vxpose.xlu0.c.b16.start.end [1/1] (short) (narrow) %v237_v11, 16 }
  0x45   : > { %272 = vxpose.xlu1.c.b16.start.end [1/1] (short) (narrow) %v238_v12, 16 }
  0xe0   : > { %v248_v13 = vpop.trf.xlu0 }
  0xe1   : > { %647 = vmatmul.msk.bf16.vlgmr.msra.gmra.mxu0 %vm312_vm0, %v248_v13  ;;  %v296_v14 = vpop.trf.xlu1 }
  0xe2   : > { %650 = vmatmul.msk.bf16.vlgmr.msra.gmra.mxu3 %vm312_vm0, %v296_v14 }
  0xf0   : > { %v264_v15 = vpop.trf.xlu0 }
  0xf1   : > { %648 = vmatmul.msk.bf16.gmra.mxu0 %vm312_vm0, %v264_v15  ;;  %v280_v16 = vpop.trf.xlu1 }
 0x101   : > { %649 = vmatmul.msk.bf16.gmra.mxu0 %vm312_vm0, %v280_v16 }
 0x15e   : > { %v334_v17 = vpop.f32.mrf.mxu0 }
 0x165   : > { %v349_v23 = vpop.f32.mrf.mxu3 }
 0x166   : > { %v336_v18 = vpop.f32.mrf.mxu0 }
 0x167   : > { %v354_v21 = vpack.c.bf16 %v336_v18, %v334_v17 }
 0x16d   : > { %v351_v25 = vpop.f32.mrf.mxu3 }
 0x16e   : > { %v339_v19 = vpop.f32.mrf.mxu0  ;;  %v357_v27 = vpack.c.bf16 %v351_v25, %v349_v23 }
 0x176   : > { %v341_v20 = vpop.f32.mrf.mxu0 }
 0x177   : > { %v355_v22 = vpack.c.bf16 %v341_v20, %v339_v19 }
 0x179   : > { %752 = vxpose.binary.xlu2.c.b16.start.end [1/2] (short) (narrow) %v354_v21, %v355_v22, 32 }
 0x17e   : > { %v344_v24 = vpop.f32.mrf.mxu0 }
 0x186   : > { %v346_v26 = vpop.f32.mrf.mxu0 }
 0x187   : > { %v356_v28 = vpack.c.bf16 %v346_v26, %v344_v24 }
 0x199   : > { %757 = vxpose.binary.xlu2.c.b16.start.end [1/2] (short) (narrow) %v357_v27, %v356_v28, 32 }
 0x21a   : > { %v753_v30 = vpop.trf.xlu2 }
 0x222   : > { %v754_v31 = vpop.trf.xlu2 }
 0x223   : > { %655 = vmatmul.msk.bf16.vlgmr.msra.gmra.mxu1 %vm312_vm0, %v754_v31 }
 0x22a   : > { %v755_v32 = vpop.trf.xlu2 }
 0x22b   : > { %658 = vmatmul.msk.bf16.vlgmr.msra.gmra.mxu2 %vm312_vm0, %v755_v32 }
 0x232   : > { %v756_v33 = vpop.trf.xlu2 }
 0x233   : > { %656 = vmatmul.msk.bf16.gmra.mxu1 %vm312_vm0, %v756_v33 }
 0x23a   : > { %v758_v34 = vpop.trf.xlu2 }
 0x23b   : > { %659 = vmatmul.msk.bf16.gmra.mxu2 %vm312_vm0, %v758_v34 }
 0x242   : > { %v759_v35 = vpop.trf.xlu2 }
 0x243   : > { %657 = vmatmul.msk.bf16.gmra.mxu1 %vm312_vm0, %v753_v30  ;;  %661 = vmatmul.msk.bf16.vlgmr.msrb.gmra.mxu3 %vm312_vm0, %v759_v35 }
 0x24a   : > { %v760_v36 = vpop.trf.xlu2 }
 0x24b   : > { %660 = vmatmul.msk.bf16.gmra.mxu2 %vm312_vm0, %v760_v36 }
 0x252   : > { %v761_v37 = vpop.trf.xlu2 }
 0x253   : > { %662 = vmatmul.msk.bf16.gmra.mxu3 %vm312_vm0, %v761_v37 }
 0x2a0   : > { %v463_v38 = vpop.f32.mrf.mxu1 }
 0x2a1   : > { %504 = vst.msk [vmem:[%s1073_s23] sm:$0xff] %vm503_vm1, %v463_v38 }
 0x2a8   : > { %v465_v39 = vpop.f32.mrf.mxu1 }
 0x2a9   : > { %505 = vst.msk [vmem:[%s1073_s23 + $0x8] sm:$0xff] %vm503_vm1, %v465_v39 }
 0x2ae   : > { %v478_v40 = vpop.f32.mrf.mxu2 }
 0x2af   : > { %510 = vst.msk [vmem:[%s1073_s23 + $0x30] sm:$0xff] %vm503_vm1, %v478_v40 }
 0x2b0   : > { %v468_v41 = vpop.f32.mrf.mxu1 }
 0x2b1   : > { %506 = vst.msk [vmem:[%s1073_s23 + $0x10] sm:$0xff] %vm503_vm1, %v468_v41 }
 0x2b6   : > { %v480_v42 = vpop.f32.mrf.mxu2 }
 0x2b7   : > { %511 = vst.msk [vmem:[%s1073_s23 + $0x38] sm:$0xff] %vm503_vm1, %v480_v42 }
 0x2b8   : > { %v470_v43 = vpop.f32.mrf.mxu1 }
 0x2b9   : > { %507 = vst.msk [vmem:[%s1073_s23 + $0x18] sm:$0xff] %vm503_vm1, %v470_v43 }
 0x2be   : > { %v483_v44 = vpop.f32.mrf.mxu2 }
 0x2bf   : > { %512 = vst.msk [vmem:[%s1073_s23 + $0x40] sm:$0xff] %vm503_vm1, %v483_v44 }
 0x2c0   : > { %v473_v45 = vpop.f32.mrf.mxu1 }
 0x2c1   : > { %508 = vst.msk [vmem:[%s1073_s23 + $0x20] sm:$0xff] %vm503_vm1, %v473_v45 }
 0x2c6   : > { %v485_v46 = vpop.f32.mrf.mxu2  ;;  %v493_v47 = vpop.f32.mrf.mxu3 }
 0x2c7   : > { %513 = vst.msk [vmem:[%s1073_s23 + $0x48] sm:$0xff] %vm503_vm1, %v485_v46 }
 0x2c8   : > { %516 = vst.msk [vmem:[%s1073_s23 + $0x60] sm:$0xff] %vm503_vm1, %v493_v47  ;;  %v475_v48 = vpop.f32.mrf.mxu1 }
 0x2c9   : > { %509 = vst.msk [vmem:[%s1073_s23 + $0x28] sm:$0xff] %vm503_vm1, %v475_v48 }
 0x2ce   : > { %v488_v49 = vpop.f32.mrf.mxu2  ;;  %v495_v50 = vpop.f32.mrf.mxu3 }
 0x2cf   : > { %514 = vst.msk [vmem:[%s1073_s23 + $0x50] sm:$0xff] %vm503_vm1, %v488_v49 }
 0x2d0   : > { %517 = vst.msk [vmem:[%s1073_s23 + $0x68] sm:$0xff] %vm503_vm1, %v495_v50 }
 0x2d6   : > { %v490_v51 = vpop.f32.mrf.mxu2  ;;  %v498_v52 = vpop.f32.mrf.mxu3 }
 0x2d7   : > { %515 = vst.msk [vmem:[%s1073_s23 + $0x58] sm:$0xff] %vm503_vm1, %v490_v51 }
 0x2d8   : > { %518 = vst.msk [vmem:[%s1073_s23 + $0x70] sm:$0xff] %vm503_vm1, %v498_v52 }
 0x2de   : > { %v500_v53 = vpop.f32.mrf.mxu3 }
 0x2df   : > { %519 = vst.msk [vmem:[%s1073_s23 + $0x78] sm:$0xff] %vm503_vm1, %v500_v53 }
 0x2e0   : > { %879 = shalt.err (!%p876_p10)
}
 0x2e1   : > { %s930_s22 = smov 128   ;;  %s931_s25 = smov 8  }
 0x2e2   : > { %688 = dma.vmem_to_hbm [thread:$0]  (%p1018_p3), %s535_s4, 2048, %s537_s5, %s521_s7, %s930_s22, %s930_s22, %s931_s25  }
 0x2e3 PF: > { %s551_s30 = sand.u32 1, %s910_s12   ;;  %p1150_p12 = scmp.ge.s32.totalorder %s922_s15, 2 }
 0x2e4   : > { %s552_s18 = scalar_lea.sflag [#allocation4], %s551_s30 }
 0x2e5   : > { %p702_p13 = pnand %p1150_p12, %p987_p6 }
 0x2e7   : > { %p703_p0 = pneg %p702_p13 }
 0x2e9   : > { %905 = dma.done.wait (%p703_p0), %s552_s18, 2048  }
 0x2ea   : > { %907 = vsyncadd (%p703_p0), %s552_s18, 4294965248  ;;  %p17_p5 = scmp.ge.s32.totalorder %s1008_s6, 4   ;;  %s1151_s12 = smov %s914_s13 }
 0x2eb   : > { %s1152_s13 = smov %s918_s14  ;;  %s1153_s14 = smov %s1024_s10 }
 0x2ec   : > { %s1154_s15 = smov %s1008_s6  ;;  %19 = sbr.rel (!%p17_p5) target bundleno = 6 (0x6), region = 85 }
 0x2f1   :  { %558 = vsyncpa [#allocation3], 1 }
 0x2f2   :  { %560 = vsyncpa [#allocation3 + $0x1], 1 }
 0x2f3   :  { %561 = vsyncpa [#allocation6], 1 }
 0x2f4   :  { %562 = vsyncpa [#allocation4], 1 }
 0x2f5   :  { %564 = vsyncpa [#allocation4 + $0x1], 1 }

// kernel: tpu_custom_call.1
= control target key start
LH: loop header
LB: loop body
LE: loop exit
PB: predicated region body
PF: predicated region fallthrough
CT: control target
= control target key end

     0   :  { %8 = vsyncpa [#allocation3], 0  ;;  %s1089_s0 = inlined_call_operand.hbm [shape: f32[8,16,16], index: 0, kind: input, shape index: {}]   ;;  %s1090_s1 = inlined_call_operand.hbm [shape: bf16[16,32], index: 1, kind: input, shape index: {}]   ;;  %s1091_s2 = inlined_call_operand.hbm [shape: bf16[16,32], index: 2, kind: input, shape index: {}]   ;;  %s1092_s3 = inlined_call_operand.hbm [shape: f32[8,32,32], index: 3, kind: output, shape index: {}]  }
   0x1   :  { %10 = vsyncpa [#allocation3 + $0x1], 0 }
   0x2   :  { %11 = vsyncpa [#allocation6], 0 }
   0x3   :  { %12 = vsyncpa [#allocation4], 0 }
   0x4   :  { %14 = vsyncpa [#allocation4 + $0x1], 0  ;;  %s890_s12 = smov 0   ;;  %s892_s13 = smov 0  }
   0x5   :  { %s894_s14 = smov 0   ;;  %s896_s15 = smov 0  }
   0x6 LB: > { %s911_s16 = sadd.s32 4294967295, %s860_s15   ;;  %s578_s17 = sadd.s32 4294967294, %s860_s15   ;;  %s860_s15 = sphi %s896_s15, %s1102_s15   ;;  %s856_s14 = sphi %s894_s14, %s1101_s14   ;;  %s852_s13 = sphi %s892_s13, %s1100_s13   ;;  %s848_s12 = sphi %s890_s12, %s1099_s12  }
   0x7   : > { %p40_p0 = scmp.ne.s32.totalorder %s852_s13, %s848_s12  ;;  %p41_p1 = scmp.eq.s32.totalorder %s911_s16, 0 }
   0x8   : > { %p106_p2 = scmp.eq.s32.totalorder %s911_s16, 1  ;;  %p112_p3 = scmp.eq.s32.totalorder %s578_s17, 1 }
   0x9   : > { %p920_p4 = por %p41_p1, %p40_p0  ;;  %p579_p5 = scmp.ge.s32.totalorder %s860_s15, 1 }
   0xa   : > { %p925_p6 = por %p112_p3, %p40_p0  ;;  %p119_p7 = scmp.lt.s32.totalorder %s860_s15, 3 }
   0xb   : > { %s130_s22 = sshll.u32 %s1090_s1, 4  ;;  %s862_s24 = smov [#allocation5]   ;;  %s131_s22 = int_to_ptr.hbm [resolvable:$true] %s130_s22 }
   0xc   : > { %p933_p8 = pnand %p579_p5, %p119_p7  ;;  %s132_s25 = sshll.u32 %s862_s24, 4  ;;  %s133_s25 = int_to_ptr.vmem [resolvable:$true] %s132_s25 }
   0xd   : > { %s144_s28 = sshll.u32 %s1091_s2, 4  ;;  %s863_s29 = smov 64   ;;  %s145_s28 = int_to_ptr.hbm [resolvable:$true] %s144_s28 }
   0xe   : > { %p638_p9 = pneg %p933_p8  ;;  %s864_s30 = smov 4  }
   0xf   : > { %s865_s4 = smov [#allocation7]   ;;  %s946_s6 = sadd.s32 1, %s860_s15  }
  0x10   : > { %p639_p10 = pnand %p638_p9, %p41_p1  ;;  %s146_s5 = sshll.u32 %s865_s4, 4  ;;  %s147_s5 = int_to_ptr.vmem [resolvable:$true] %s146_s5 }
  0x11   : > { %s27_s7 = sadd.s32 1, %s856_s14  ;;  %s24_s8 = ssub.s32 %s860_s15, %s946_s6 }
  0x12   : > { %641 = dma.hbm_to_vmem [thread:$0]  (!%p639_p10), %s131_s22, 128, %s133_s25, [#allocation6], %s863_s29, %s863_s29, %s864_s30  }
  0x13   : > { %644 = dma.hbm_to_vmem [thread:$0]  (!%p639_p10), %s145_s28, 128, %s147_s5, [#allocation6], %s863_s29, %s863_s29, %s864_s30  }
  0x14   : > { %p34_p12 = scmp.ne.s32.totalorder %s856_s14, %s852_s13  ;;  %p25_p13 = scmp.eq.s32.totalorder %s24_s8, 0 }
  0x15   : > { %p35_p0 = scmp.eq.s32.totalorder %s860_s15, 0  ;;  %p655_p5 = scmp.lt.s32.totalorder %s860_s15, 2 }
  0x16   : > { %p956_p3 = por %p106_p2, %p34_p12  ;;  %s160_s11 = sand.u32 1, %s856_s14  }
  0x17   : > { %s962_s10 = scalar_select %p25_p13, %s856_s14, %s27_s7  }
  0x18   : > { %p36_p7 = por %p35_p0, %p34_p12  ;;  %s583_s17 = sshll.u32 %s160_s11, 6 }
  0x19   : > { %s619_s20 = sshll.u32 %s860_s15, 6  ;;  %s164_s25 = scalar_lea.vmem [#allocation2], %s583_s17 }
  0x1a   : > { %s170_s24 = scalar_lea.hbm %s1089_s0, %s619_s20  ;;  %s173_s26 = sshll.u32 %s164_s25, 4  ;;  %s174_s26 = int_to_ptr.vmem [resolvable:$true] %s173_s26 }
  0x1b   : > { %s171_s27 = sshll.u32 %s170_s24, 4  ;;  %p969_p2 = pnand %p655_p5, %p36_p7  ;;  %s172_s27 = int_to_ptr.hbm [resolvable:$true] %s171_s27 }
  0x1c   : > { %s161_s29 = scalar_lea.sflag [#allocation3], %s160_s11  ;;  %s760_s30 = sshra.s32 %s172_s27, 4  ;;  %s761_s30 = int_to_ptr.hbm [resolvable:$true] %s760_s30 }
  0x1d   : > { %s762_s4 = scalar_lea.hbm %s761_s30, 64  ;;  %p764_p10 = pneg %p969_p2 }
  0x1e   : > { %p763_p9 = scmp.ne.s32.totalorder %s761_s30, %s762_s4  ;;  %s767_s8 = scalar_lea.hbm %s1089_s0, 128 }
  0x1f   : > { %p768_p0 = scmp.lt.s32.totalorder %s761_s30, %s1089_s0  ;;  %p769_p5 = scmp.lt.s32.totalorder %s767_s8, %s762_s4 }
  0x20   : > { %p765_p12 = pnand %p764_p10, %p763_p9 }
  0x21   : > { %p770_p7 = por %p769_p5, %p768_p0 }
  0x22   : > { %p766_p13 = pneg %p765_p12 }
  0x24   : > { %p771_p11 = pnand %p770_p7, %p766_p13 }
  0x26   : > { %774 = shalt.err (!%p771_p11)
}
  0x27   : > { %s866_s11 = smov 128   ;;  %s867_s21 = smov 8  }
  0x28   : > { %648 = dma.hbm_to_vmem [thread:$0]  (!%p969_p2), %s172_s27, 1024, %s174_s26, %s161_s29, %s866_s11, %s866_s11, %s867_s21  }
  0x29   : > { %185 = sbr.rel (%p933_p8) target bundleno = 415 (0x19f), region = 32  ;;  %s986_s22 = sand.u32 (!%p933_p8), 1, %s852_s13  }
  0x2a   : > { %s588_s24 = sshll.u32 (!%p933_p8), %s986_s22, 6  ;;  %s188_s25 = scalar_lea.sflag (!%p933_p8), [#allocation3], %s986_s22 }
  0x2b   : > { %s990_s30 = scalar_lea.vmem (!%p933_p8), [#allocation2], %s588_s24 }
  0x2e   : > { %835 = dma.done.wait (%p920_p4), %s188_s25, 1024  }
  0x2f   : > { %837 = vsyncadd (%p920_p4), %s188_s25, 4294966272 }
  0x30   : > { %839 = dma.done.wait (%p41_p1), [#allocation6], 256  }
  0x31   : > { %841 = vsyncadd (%p41_p1), [#allocation6], 4294967040  ;;  %v621_v0 = vld [vmem:[#allocation5] sm:$0xff]  ;;  %v620_v1 = vld [vmem:[#allocation7] sm:$0xff]  ;;  %vm272_vm0 = vcmask 130048   ;;  %s591_s18 = sshll.u32 %s986_s22, 7 }
  0x32   : > { %v228_v2 = vld [vmem:[%s990_s30] sm:$0xff]  ;;  %v229_v3 = vld [vmem:[%s990_s30 + $0x8] sm:$0xff]  ;;  %330 = vxpose.xlu0.c.b16.start.end [1/1] (short) (narrow) %v621_v0, 32  ;;  %292 = vmatpush.bf16.msra.mxu0 %v620_v1  ;;  %v234_v6 = vld [vmem:[%s990_s30 + $0x30] sm:$0xff]  ;;  %vm452_vm1 = vcmask 261120   ;;  %s1021_s23 = scalar_lea.vmem [#allocation8], %s591_s18 }
  0x33   : > { %v236_v4 = vpack.c.bf16 %v228_v2, %v228_v2  ;;  %v237_v5 = vpack.c.bf16 %v229_v3, %v229_v3  ;;  %v235_v7 = vld [vmem:[%s990_s30 + $0x38] sm:$0xff]  ;;  %624 = vmatpush.bf16.msra.mxu2 %v620_v1  ;;  %v242_v9 = vpack.c.bf16 %v234_v6, %v234_v6  ;;  %v230_v16 = vld [vmem:[%s990_s30 + $0x10] sm:$0xff]  ;;  %v232_v23 = vld [vmem:[%s990_s30 + $0x20] sm:$0xff]  ;;  %s623_s26 = sshll.u32 %s911_s16, 7  ;;  %s483_s4 = sshll.u32 %s1021_s23, 4  ;;  %s484_s4 = int_to_ptr.vmem [resolvable:$true] %s483_s4 }
  0x34   : > { %v243_v10 = vpack.c.bf16 %v235_v7, %v235_v7  ;;  %v231_v17 = vld [vmem:[%s990_s30 + $0x18] sm:$0xff]  ;;  %v238_v18 = vpack.c.bf16 %v230_v16, %v230_v16  ;;  %v233_v24 = vld [vmem:[%s990_s30 + $0x28] sm:$0xff]  ;;  %v240_v25 = vpack.c.bf16 %v232_v23, %v232_v23  ;;  %s482_s29 = scalar_lea.hbm %s1092_s3, %s623_s26  ;;  %s470_s7 = scalar_lea.sflag [#allocation4], %s986_s22 }
  0x35   : > { %v254_v8 = vunpack.c.l.b16 %v236_v4  ;;  %v255_v11 = vunpack.c.l.b16 %v237_v5  ;;  %v260_v12 = vunpack.c.l.b16 %v242_v9  ;;  %v239_v19 = vpack.c.bf16 %v231_v17, %v231_v17  ;;  %s485_s5 = sshll.u32 %s482_s29, 4  ;;  %s810_s11 = scalar_lea.hbm %s1092_s3, 256  ;;  %s486_s5 = int_to_ptr.hbm [resolvable:$true] %s485_s5 }
  0x36   : > { %v261_v13 = vunpack.c.l.b16 %v243_v10  ;;  %v256_v20 = vunpack.c.l.b16 %v238_v18  ;;  %v241_v26 = vpack.c.bf16 %v233_v24, %v233_v24  ;;  %v258_v27 = vunpack.c.l.b16 %v240_v25  ;;  %s804_s8 = sshra.s32 %s486_s5, 4  ;;  %s805_s8 = int_to_ptr.hbm [resolvable:$true] %s804_s8 }
  0x37   : > { %v262_v14 = vpack.c.b16 %v255_v11, %v254_v8  ;;  %v257_v21 = vunpack.c.l.b16 %v239_v19  ;;  %s806_s17 = scalar_lea.hbm %s805_s8, 128  ;;  %p811_p11 = scmp.lt.s32.totalorder %s805_s8, %s1092_s3 }
  0x38   : > { %v265_v15 = vpack.c.b16 %v261_v13, %v260_v12  ;;  %v259_v28 = vunpack.c.l.b16 %v241_v26  ;;  %p807_p1 = scmp.ne.s32.totalorder %s805_s8, %s806_s17  ;;  %p812_p2 = scmp.lt.s32.totalorder %s810_s11, %s806_s17 }
  0x39   : > { %596 = vmatmul.msk.bf16.vlgmr.msra.gmra.mxu0 %vm272_vm0, %v262_v14  ;;  %v263_v22 = vpack.c.b16 %v257_v21, %v256_v20 }
  0x3a   : > { %599 = vmatmul.msk.bf16.vlgmr.msra.gmra.mxu2 %vm272_vm0, %v265_v15  ;;  %v264_v29 = vpack.c.b16 %v259_v28, %v258_v27  ;;  %p808_p4 = pnand %p807_p1, %p956_p3  ;;  %p813_p9 = por %p812_p2, %p811_p11 }
  0x3c   : > { %p809_p8 = pneg %p808_p4 }
  0x3e   : > { %p814_p10 = pnand %p813_p9, %p809_p8 }
  0x49   : > { %597 = vmatmul.msk.bf16.gmra.mxu0 %vm272_vm0, %v263_v22 }
  0x59   : > { %598 = vmatmul.msk.bf16.gmra.mxu0 %vm272_vm0, %v264_v29 }
  0xb6   : > { %v294_v30 = vpop.f32.mrf.mxu0 }
  0xb7   : > { %v314_v31 = vpack.c.bf16 %v294_v30, %v294_v30 }
  0xb9   : > { %v348_v34 = vunpack.c.l.b16 %v314_v31 }
  0xbd   : > { %v309_v32 = vpop.f32.mrf.mxu2 }
  0xbe   : > { %v296_v33 = vpop.f32.mrf.mxu0  ;;  %v320_v37 = vpack.c.bf16 %v309_v32, %v309_v32 }
  0xbf   : > { %v315_v35 = vpack.c.bf16 %v296_v33, %v296_v33 }
  0xc0   : > { %v429_v41 = vunpack.c.l.b16 %v320_v37 }
  0xc1   : > { %v349_v36 = vunpack.c.l.b16 %v315_v35 }
  0xc3   : > { %v350_v38 = vpack.c.b16 %v349_v36, %v348_v34 }
  0xc5   : > { %365 = vmatpush.bf16.msra.mxu1 %v350_v38  ;;  %625 = vmatpush.bf16.msra.mxu3 %v350_v38  ;;  %v311_v39 = vpop.f32.mrf.mxu2 }
  0xc6   : > { %v299_v40 = vpop.f32.mrf.mxu0  ;;  %v321_v42 = vpack.c.bf16 %v311_v39, %v311_v39 }
  0xc7   : > { %v316_v45 = vpack.c.bf16 %v299_v40, %v299_v40 }
  0xc8   : > { %v430_v43 = vunpack.c.l.b16 %v321_v42 }
  0xc9   : > { %v379_v47 = vunpack.c.l.b16 %v316_v45 }
  0xca   : > { %v431_v44 = vpack.c.b16 %v430_v43, %v429_v41 }
  0xcc   : > { %440 = vmatpush.bf16.msrb.mxu1 %v431_v44 }
  0xce   : > { %v301_v46 = vpop.f32.mrf.mxu0 }
  0xcf   : > { %v317_v48 = vpack.c.bf16 %v301_v46, %v301_v46 }
  0xd1   : > { %v380_v49 = vunpack.c.l.b16 %v317_v48 }
  0xd3   : > { %v381_v50 = vpack.c.b16 %v380_v49, %v379_v47 }
  0xd5   : > { %390 = vmatpush.bf16.msrb.mxu2 %v381_v50 }
  0xd6   : > { %v304_v51 = vpop.f32.mrf.mxu0 }
  0xd7   : > { %v318_v52 = vpack.c.bf16 %v304_v51, %v304_v51 }
  0xd9   : > { %v404_v54 = vunpack.c.l.b16 %v318_v52 }
  0xde   : > { %v306_v53 = vpop.f32.mrf.mxu0  ;;  %v338_v55 = vpop.trf.xlu0 }
  0xdf   : > { %v319_v56 = vpack.c.bf16 %v306_v53, %v306_v53  ;;  %604 = vmatmul.msk.bf16.vlgmr.msra.gmra.mxu1 %vm272_vm0, %v338_v55  ;;  %606 = vmatmul.msk.bf16.vlgmr.msrb.gmra.mxu2 %vm272_vm0, %v338_v55 }
  0xe1   : > { %v405_v57 = vunpack.c.l.b16 %v319_v56 }
  0xe3   : > { %v406_v58 = vpack.c.b16 %v405_v57, %v404_v54 }
  0xe5   : > { %415 = vmatpush.bf16.msrb.mxu3 %v406_v58 }
  0xee   : > { %v339_v59 = vpop.trf.xlu0 }
  0xef   : > { %605 = vmatmul.msk.bf16.vlgmr.msra.gmra.mxu3 %vm272_vm0, %v339_v59  ;;  %607 = vmatmul.msk.bf16.gmra.mxu2 %vm272_vm0, %v339_v59 }
  0xf0   : > { %610 = vmatmul.msk.bf16.vlgmr.msrb.gmra.mxu1 %vm272_vm0, %v338_v55 }
  0xff   : > { %608 = vmatmul.msk.bf16.vlgmr.msrb.gmra.mxu3 %vm272_vm0, %v338_v55 }
 0x100   : > { %611 = vmatmul.msk.bf16.gmra.mxu1 %vm272_vm0, %v339_v59 }
 0x10f   : > { %609 = vmatmul.msk.bf16.gmra.mxu3 %vm272_vm0, %v339_v59 }
 0x15c   : > { %v367_v60 = vpop.f32.mrf.mxu1 }
 0x15d   : > { %453 = vst.msk [vmem:[%s1021_s23] sm:$0xff] %vm452_vm1, %v367_v60 }
 0x162   : > { %v392_v61 = vpop.f32.mrf.mxu2 }
 0x163   : > { %457 = vst.msk [vmem:[%s1021_s23 + $0x20] sm:$0xff] %vm452_vm1, %v392_v61 }
 0x164   : > { %v369_v62 = vpop.f32.mrf.mxu1 }
 0x165   : > { %454 = vst.msk [vmem:[%s1021_s23 + $0x8] sm:$0xff] %vm452_vm1, %v369_v62 }
 0x16a   : > { %v394_v63 = vpop.f32.mrf.mxu2 }
 0x16b   : > { %458 = vst.msk [vmem:[%s1021_s23 + $0x28] sm:$0xff] %vm452_vm1, %v394_v63 }
 0x16d   : > { %v442_v0 = vpop.f32.mrf.mxu1 }
 0x16e   : > { %465 = vst.msk [vmem:[%s1021_s23 + $0x60] sm:$0xff] %vm452_vm1, %v442_v0 }
 0x172   : > { %v372_v1 = vpop.f32.mrf.mxu3  ;;  %v397_v2 = vpop.f32.mrf.mxu2 }
 0x173   : > { %455 = vst.msk [vmem:[%s1021_s23 + $0x10] sm:$0xff] %vm452_vm1, %v372_v1 }
 0x174   : > { %459 = vst.msk [vmem:[%s1021_s23 + $0x30] sm:$0xff] %vm452_vm1, %v397_v2 }
 0x175   : > { %v444_v3 = vpop.f32.mrf.mxu1 }
 0x176   : > { %466 = vst.msk [vmem:[%s1021_s23 + $0x68] sm:$0xff] %vm452_vm1, %v444_v3 }
 0x17a   : > { %v374_v4 = vpop.f32.mrf.mxu3  ;;  %v399_v5 = vpop.f32.mrf.mxu2 }
 0x17b   : > { %456 = vst.msk [vmem:[%s1021_s23 + $0x18] sm:$0xff] %vm452_vm1, %v374_v4 }
 0x17c   : > { %460 = vst.msk [vmem:[%s1021_s23 + $0x38] sm:$0xff] %vm452_vm1, %v399_v5 }
 0x17d   : > { %v447_v6 = vpop.f32.mrf.mxu1 }
 0x17e   : > { %467 = vst.msk [vmem:[%s1021_s23 + $0x70] sm:$0xff] %vm452_vm1, %v447_v6 }
 0x182   : > { %v417_v7 = vpop.f32.mrf.mxu3 }
 0x183   : > { %461 = vst.msk [vmem:[%s1021_s23 + $0x40] sm:$0xff] %vm452_vm1, %v417_v7 }
 0x185   : > { %v449_v8 = vpop.f32.mrf.mxu1 }
 0x186   : > { %468 = vst.msk [vmem:[%s1021_s23 + $0x78] sm:$0xff] %vm452_vm1, %v449_v8 }
 0x18a   : > { %v419_v9 = vpop.f32.mrf.mxu3 }
 0x18b   : > { %462 = vst.msk [vmem:[%s1021_s23 + $0x48] sm:$0xff] %vm452_vm1, %v419_v9 }
 0x192   : > { %v422_v10 = vpop.f32.mrf.mxu3 }
 0x193   : > { %463 = vst.msk [vmem:[%s1021_s23 + $0x50] sm:$0xff] %vm452_vm1, %v422_v10 }
 0x19a   : > { %v424_v11 = vpop.f32.mrf.mxu3 }
 0x19b   : > { %464 = vst.msk [vmem:[%s1021_s23 + $0x58] sm:$0xff] %vm452_vm1, %v424_v11 }
 0x19c   : > { %817 = shalt.err (!%p814_p10)
}
 0x19d   : > { %s868_s22 = smov 128   ;;  %s869_s25 = smov 8  }
 0x19e   : > { %636 = dma.vmem_to_hbm [thread:$0]  (%p956_p3), %s484_s4, 2048, %s486_s5, %s470_s7, %s868_s22, %s868_s22, %s869_s25  }
 0x19f PF: > { %s500_s30 = sand.u32 1, %s848_s12   ;;  %p1098_p12 = scmp.ge.s32.totalorder %s860_s15, 2 }
 0x1a0   : > { %s501_s18 = scalar_lea.sflag [#allocation4], %s500_s30 }
 0x1a1   : > { %p650_p13 = pnand %p1098_p12, %p925_p6 }
 0x1a3   : > { %p651_p0 = pneg %p650_p13 }
 0x1a5   : > { %843 = dma.done.wait (%p651_p0), %s501_s18, 2048  }
 0x1a6   : > { %845 = vsyncadd (%p651_p0), %s501_s18, 4294965248  ;;  %p17_p5 = scmp.ge.s32.totalorder %s946_s6, 4   ;;  %s1099_s12 = smov %s852_s13 }
 0x1a7   : > { %s1100_s13 = smov %s856_s14  ;;  %s1101_s14 = smov %s962_s10 }
 0x1a8   : > { %s1102_s15 = smov %s946_s6  ;;  %19 = sbr.rel (!%p17_p5) target bundleno = 6 (0x6), region = 85 }
 0x1ad   :  { %507 = vsyncpa [#allocation3], 1 }
 0x1ae   :  { %509 = vsyncpa [#allocation3 + $0x1], 1 }
 0x1af   :  { %510 = vsyncpa [#allocation6], 1 }
 0x1b0   :  { %511 = vsyncpa [#allocation4], 1 }
 0x1b1   :  { %513 = vsyncpa [#allocation4 + $0x1], 1 }

</bundles_post_ra>
